<compile_context>
chip_gen: v5e
topology: v5e:2x2
jax: 0.10.0
libtpu: 0.0.40
codegen_flags: <defaults>
</compile_context>

<pallas_src>
import functools

import numpy as np
import jax
import jax.numpy as jnp
from jax.experimental import pallas as pl
from jax.experimental.pallas import tpu as pltpu
from jax.scipy.linalg import block_diag


NHEAD = 5
PT = (0.0, 0.2, 0.4, 0.6, 0.8, 1.0)


def _vmem_capacity_bytes():
    try:
        info = pltpu.get_tpu_info()
        cap = getattr(info, "vmem_capacity_bytes", None)
        if cap:
            return int(cap)
    except Exception:
        pass
    return 64 * 1024 * 1024      # conservative default (v7x per-TC VMEM)


# ----------------------------- Pallas kernel -------------------------------
def drnet_kernel(t_ref, x_ref, w0_ref, w1_ref, qw0c_ref, qw1b_ref, vec_ref,
                 out_ref, *, h0, h1, q0, out_dim):
    t = t_ref[...]                       # (TM, 1) treatment
    x = x_ref[...]                       # (TM, DIN)
    vec = vec_ref[...]                   # (8, W) packed bias/treat/bound rows

    wq0 = NHEAD * q0
    wq1 = NHEAD * out_dim

    b0 = vec[0:1, :h0]
    b1 = vec[1:2, :h1]
    qt0 = vec[2:3, :wq0]
    qb0 = vec[3:4, :wq0]
    qt1 = vec[4:5, :wq1]
    qb1 = vec[5:6, :wq1]
    lo = vec[6:7, :wq1]
    hi = vec[7:8, :wq1]

    # hidden_features: two Linear + ReLU layers
    h = jnp.maximum(
        jnp.dot(x, w0_ref[...], preferred_element_type=jnp.float32) + b0, 0.0)
    h = jnp.maximum(
        jnp.dot(h, w1_ref[...], preferred_element_type=jnp.float32) + b1, 0.0)

    # all 5 heads, layer 0 fused into one matmul: (TM, H1) @ (H1, 5*Q0)
    tb = jnp.broadcast_to(t, (t.shape[0], wq0))       # single hoisted broadcast
    z0 = jnp.maximum(
        jnp.dot(h, qw0c_ref[...], preferred_element_type=jnp.float32)
        + tb * qt0 + qb0, 0.0)                        # (TM, 5*Q0)

    # all 5 heads, layer 1 (last, no act), block-diagonal: (5*Q0, 5*OUT)
    tbw = tb[:, :wq1]                                  # reuse hoisted broadcast
    z1 = (jnp.dot(z0, qw1b_ref[...], preferred_element_type=jnp.float32)
          + tbw * qt1 + qb1)                           # (TM, 5*OUT)

    # route each row to its owning head with a one-hot bin mask
    # (last bin's hi row is nextafter(1.0): "< hi" == "<= 1.0" exactly for f32)
    mask = (tbw >= lo) & (tbw < hi)
    routed = jnp.where(mask, z1, 0.0)
    if out_dim == 1:
        out = jnp.sum(routed, axis=1, keepdims=True)   # XLU lane reduce
    else:
        out = routed[:, 0:out_dim]
        for hd in range(1, NHEAD):
            out = out + routed[:, hd * out_dim:(hd + 1) * out_dim]
    out_ref[...] = out


# ------------------------------- wrapper ------------------------------------
def drnet_forward(t, x, params, *, block_rows=None):
    """Returns (g, Q) like Drnet.forward; g is None."""
    (w0, b0, w1, b1, qw0, qt0, qb0, qw1, qt1, qb1) = params
    B, din = x.shape
    h0 = w0.shape[1]
    h1 = w1.shape[1]
    q0 = qw0.shape[-1]
    out_dim = qw1.shape[-1]
    wq0 = NHEAD * q0
    wq1 = NHEAD * out_dim

    # ---- fuse the 5 heads into two weight matrices (tiny, wrapper-side) ----
    qw0c = jnp.concatenate([qw0[hd] for hd in range(NHEAD)],
                           axis=1).astype(jnp.float32)          # (H1, 5*Q0)
    qw1b = block_diag(*[qw1[hd] for hd in range(NHEAD)]
                      ).astype(jnp.float32)                     # (5*Q0, 5*OUT)

    # ---- pack the six (1,N) vectors + routing bounds into one (8,W) slab ---
    W = max(h0, h1, wq0, wq1)
    lo_row = np.repeat(np.asarray(PT[:NHEAD], np.float32), out_dim)
    hi_vals = np.asarray(PT[1:], np.float32)
    hi_vals[-1] = np.nextafter(np.float32(1.0), np.float32(2.0))
    hi_row = np.repeat(hi_vals, out_dim)

    slab = jnp.zeros((8, W), jnp.float32)
    slab = slab.at[0, :h0].set(b0.astype(jnp.float32))
    slab = slab.at[1, :h1].set(b1.astype(jnp.float32))
    slab = slab.at[2, :wq0].set(qt0.astype(jnp.float32).reshape(-1))
    slab = slab.at[3, :wq0].set(qb0.astype(jnp.float32).reshape(-1))
    slab = slab.at[4, :wq1].set(qt1.astype(jnp.float32).reshape(-1))
    slab = slab.at[5, :wq1].set(qb1.astype(jnp.float32).reshape(-1))
    slab = slab.at[6, :wq1].set(jnp.asarray(lo_row))
    slab = slab.at[7, :wq1].set(jnp.asarray(hi_row))

    w0f = w0.astype(jnp.float32)
    w1f = w1.astype(jnp.float32)
    t2 = t.reshape(B, 1).astype(jnp.float32)
    x2 = x.astype(jnp.float32)

    # ---- generation-aware batch tile: fit VMEM, keep >=2 grid steps --------
    vmem_cap = _vmem_capacity_bytes()
    per_row = 4 * (2 * (din + 1 + out_dim)     # double-buffered t / x / out blocks
                   + h0 + h1                    # hidden activations
                   + 3 * wq0                    # z0, t-broadcast, matmul staging
                   + 4 * wq1 + 8)               # z1, mask, routed, slack
    if block_rows is None:
        tm = (vmem_cap // 2) // per_row
        tm = max(256, min(tm, 32768))
        # keep at least 2 grid steps so "parallel" can use both v7x TCs
        tm = min(tm, ((pl.cdiv(B, 2) + 7) // 8) * 8)
    else:
        tm = block_rows
    tm = min(tm, ((B + 7) // 8) * 8)
    tm = max(8, (int(tm) // 8) * 8)

    grid_m = pl.cdiv(B, tm)
    bp = grid_m * tm                 # only the tiny output is padded

    kernel = functools.partial(drnet_kernel, h0=h0, h1=h1, q0=q0,
                               out_dim=out_dim)

    q = pl.pallas_call(
        kernel,
        out_shape=jax.ShapeDtypeStruct((bp, out_dim), jnp.float32),
        grid_spec=pltpu.PrefetchScalarGridSpec(
            num_scalar_prefetch=0,
            grid=(grid_m,),
            in_specs=[
                pl.BlockSpec((tm, 1), lambda i: (i, 0)),        # t
                pl.BlockSpec((tm, din), lambda i: (i, 0)),      # x
                pl.BlockSpec(w0f.shape, lambda i: (0, 0)),      # resident weights
                pl.BlockSpec(w1f.shape, lambda i: (0, 0)),
                pl.BlockSpec(qw0c.shape, lambda i: (0, 0)),
                pl.BlockSpec(qw1b.shape, lambda i: (0, 0)),
                pl.BlockSpec(slab.shape, lambda i: (0, 0)),     # packed vectors
            ],
            out_specs=pl.BlockSpec((tm, out_dim), lambda i: (i, 0)),
        ),
        compiler_params=pltpu.CompilerParams(
            dimension_semantics=("parallel",),
            vmem_limit_bytes=int(vmem_cap * 0.9)),
    )(t2, x2, w0f, w1f, qw0c, qw1b, slab)

    return None, q[:B]


# ---------------------------- plain-JAX reference ---------------------------
def drnet_reference(t, x, params):
    (w0, b0, w1, b1, qw0, qt0, qb0, qw1, qt1, qb1) = params
    h = jnp.maximum(x @ w0 + b0, 0.0)
    h = jnp.maximum(h @ w1 + b1, 0.0)
    tcol = t.reshape(-1, 1)
    out = jnp.zeros((x.shape[0], qw1.shape[-1]), jnp.float32)
    for hd in range(NHEAD):
        z0 = jnp.maximum(h @ qw0[hd] + tcol * qt0[hd] + qb0[hd], 0.0)
        z1 = z0 @ qw1[hd] + tcol * qt1[hd] + qb1[hd]
        if hd < NHEAD - 1:
            m = (tcol >= PT[hd]) & (tcol < PT[hd + 1])
        else:
            m = (tcol >= PT[hd]) & (tcol <= PT[hd + 1])
        out = out + jnp.where(m, z1, 0.0)
    return out


# --------------------------------- main --------------------------------------
if __name__ == "__main__":
    # Shapes consistent with the module:
    #   cfg_density = [(4, 32, 1, 'relu'), (32, 16, 1, 'relu')]
    #   cfg         = [(16, 32, 1, 'relu'), (32, 1, 1, 'id')], isenhance = 1
    B, DIN, H0, H1, Q0, OUT = 50, 4, 32, 16, 32, 1

    key = jax.random.PRNGKey(0)
    ks = jax.random.split(key, 14)

    # inputs (dose in [0,1])
    t = jax.random.uniform(ks[0], (B,), jnp.float32)
    x = jax.random.uniform(ks[1], (B, DIN), jnp.float32)

    # hidden_features (nn.Linear-like): weights stored as (in, out) for x @ W
    w0 = jax.random.normal(ks[2], (DIN, H0), jnp.float32) * 0.1
    b0 = jax.random.normal(ks[3], (H0,), jnp.float32) * 0.1
    w1 = jax.random.normal(ks[4], (H0, H1), jnp.float32) * 0.1
    b1 = jax.random.normal(ks[5], (H1,), jnp.float32) * 0.1

    # Multi_head: 5 heads, each with 2 Treat_Linear layers (torch.rand init)
    qw0 = jax.random.uniform(ks[6], (NHEAD, H1, Q0), jnp.float32)
    qt0 = jax.random.uniform(ks[7], (NHEAD, 1, Q0), jnp.float32)
    qb0 = jax.random.uniform(ks[8], (NHEAD, 1, Q0), jnp.float32)
    qw1 = jax.random.uniform(ks[9], (NHEAD, Q0, OUT), jnp.float32)
    qt1 = jax.random.uniform(ks[10], (NHEAD, 1, OUT), jnp.float32)
    qb1 = jax.random.uniform(ks[11], (NHEAD, 1, OUT), jnp.float32)

    params = (w0, b0, w1, b1, qw0, qt0, qb0, qw1, qt1, qb1)

    # Auto tile selection: at B=50 it picks TM=32 -> a 2-step grid with a
    # ragged last block (rows 50..63 unused), exercising the production path.
    g, q_out = drnet_forward(t, x, params)
    q_out = jax.block_until_ready(q_out)

    q_ref = drnet_reference(t, x, params)
    assert g is None  # TODO(synk): Density_Block is unused by Drnet.forward (g=None), so it is not implemented.
    assert q_out.shape == (B, OUT)
    assert jnp.allclose(q_out, q_ref, rtol=1e-5, atol=1e-4), (q_out, q_ref)

    print("KERNEL_OK")
</pallas_src>

<mosaic_0001>
module attributes {stable_mosaic.version = 11 : i64} {
  func.func @drnet_kernel(%arg0: i32, %arg1: memref<32x1xf32, #tpu.memory_space<vmem>>, %arg2: memref<32x4xf32, #tpu.memory_space<vmem>>, %arg3: memref<4x32xf32, #tpu.memory_space<vmem>>, %arg4: memref<32x16xf32, #tpu.memory_space<vmem>>, %arg5: memref<16x160xf32, #tpu.memory_space<vmem>>, %arg6: memref<160x5xf32, #tpu.memory_space<vmem>>, %arg7: memref<8x160xf32, #tpu.memory_space<vmem>>, %arg8: memref<32x1xf32, #tpu.memory_space<vmem>>) attributes {dimension_semantics = [#tpu.dimension_semantics<parallel>], iteration_bounds = array<i64: 2>, scalar_prefetch = 0 : i64, scratch_operands = 0 : i64, tpu.core_type = #tpu.core_type<tc>, window_params = [{transform_indices = @transform_0, window_bounds = array<i64: 32, 1>}, {transform_indices = @transform_1, window_bounds = array<i64: 32, 4>}, {pipeline_mode = #tpu.pipeline_mode<synchronous>, transform_indices = @transform_2, window_bounds = array<i64: 4, 32>}, {pipeline_mode = #tpu.pipeline_mode<synchronous>, transform_indices = @transform_3, window_bounds = array<i64: 32, 16>}, {pipeline_mode = #tpu.pipeline_mode<synchronous>, transform_indices = @transform_4, window_bounds = array<i64: 16, 160>}, {pipeline_mode = #tpu.pipeline_mode<synchronous>, transform_indices = @transform_5, window_bounds = array<i64: 160, 5>}, {pipeline_mode = #tpu.pipeline_mode<synchronous>, transform_indices = @transform_6, window_bounds = array<i64: 8, 160>}, {transform_indices = @transform_7, window_bounds = array<i64: 32, 1>}]} {
    %c0 = arith.constant 0 : index
    %c0_0 = arith.constant 0 : index
    %0 = vector.load %arg1[%c0, %c0_0] : memref<32x1xf32, #tpu.memory_space<vmem>>, vector<32x1xf32>
    %c0_1 = arith.constant 0 : index
    %c0_2 = arith.constant 0 : index
    %1 = vector.load %arg2[%c0_1, %c0_2] : memref<32x4xf32, #tpu.memory_space<vmem>>, vector<32x4xf32>
    %c0_3 = arith.constant 0 : index
    %c0_4 = arith.constant 0 : index
    %2 = vector.load %arg7[%c0_3, %c0_4] : memref<8x160xf32, #tpu.memory_space<vmem>>, vector<8x160xf32>
    %3 = vector.extract_strided_slice %2 {offsets = [0, 0], sizes = [1, 32], strides = [1, 1]} : vector<8x160xf32> to vector<1x32xf32>
    %4 = vector.extract_strided_slice %2 {offsets = [1, 0], sizes = [1, 16], strides = [1, 1]} : vector<8x160xf32> to vector<1x16xf32>
    %5 = vector.extract_strided_slice %2 {offsets = [2, 0], sizes = [1, 160], strides = [1, 1]} : vector<8x160xf32> to vector<1x160xf32>
    %6 = vector.extract_strided_slice %2 {offsets = [3, 0], sizes = [1, 160], strides = [1, 1]} : vector<8x160xf32> to vector<1x160xf32>
    %7 = vector.extract_strided_slice %2 {offsets = [4, 0], sizes = [1, 5], strides = [1, 1]} : vector<8x160xf32> to vector<1x5xf32>
    %8 = vector.extract_strided_slice %2 {offsets = [5, 0], sizes = [1, 5], strides = [1, 1]} : vector<8x160xf32> to vector<1x5xf32>
    %9 = vector.extract_strided_slice %2 {offsets = [6, 0], sizes = [1, 5], strides = [1, 1]} : vector<8x160xf32> to vector<1x5xf32>
    %10 = vector.extract_strided_slice %2 {offsets = [7, 0], sizes = [1, 5], strides = [1, 1]} : vector<8x160xf32> to vector<1x5xf32>
    %c0_5 = arith.constant 0 : index
    %c0_6 = arith.constant 0 : index
    %11 = vector.load %arg3[%c0_5, %c0_6] : memref<4x32xf32, #tpu.memory_space<vmem>>, vector<4x32xf32>
    %cst = arith.constant dense<0.000000e+00> : vector<32x32xf32>
    %12 = tpu.matmul %1, %11, %cst {dimension_numbers = #tpu.dot_dimension_numbers<[1], [0], [0], [1], [0, 0, 1, 1], [], []>} : vector<32x4xf32>, vector<4x32xf32>, vector<32x32xf32> -> vector<32x32xf32>
    %13 = vector.broadcast %3 : vector<1x32xf32> to vector<32x32xf32>
    %14 = arith.addf %12, %13 : vector<32x32xf32>
    %cst_7 = arith.constant 0.000000e+00 : f32
    %15 = vector.broadcast %cst_7 : f32 to vector<32x32xf32>
    %16 = arith.maximumf %14, %15 : vector<32x32xf32>
    %c0_8 = arith.constant 0 : index
    %c0_9 = arith.constant 0 : index
    %17 = vector.load %arg4[%c0_8, %c0_9] : memref<32x16xf32, #tpu.memory_space<vmem>>, vector<32x16xf32>
    %cst_10 = arith.constant dense<0.000000e+00> : vector<32x16xf32>
    %18 = tpu.matmul %16, %17, %cst_10 {dimension_numbers = #tpu.dot_dimension_numbers<[1], [0], [0], [1], [0, 0, 1, 1], [], []>} : vector<32x32xf32>, vector<32x16xf32>, vector<32x16xf32> -> vector<32x16xf32>
    %19 = vector.broadcast %4 : vector<1x16xf32> to vector<32x16xf32>
    %20 = arith.addf %18, %19 : vector<32x16xf32>
    %cst_11 = arith.constant 0.000000e+00 : f32
    %21 = vector.broadcast %cst_11 : f32 to vector<32x16xf32>
    %22 = arith.maximumf %20, %21 : vector<32x16xf32>
    %23 = vector.shape_cast %0 : vector<32x1xf32> to vector<32x1xf32>
    %24 = vector.broadcast %23 : vector<32x1xf32> to vector<32x160xf32>
    %c0_12 = arith.constant 0 : index
    %c0_13 = arith.constant 0 : index
    %25 = vector.load %arg5[%c0_12, %c0_13] : memref<16x160xf32, #tpu.memory_space<vmem>>, vector<16x160xf32>
    %cst_14 = arith.constant dense<0.000000e+00> : vector<32x160xf32>
    %26 = tpu.matmul %22, %25, %cst_14 {dimension_numbers = #tpu.dot_dimension_numbers<[1], [0], [0], [1], [0, 0, 1, 1], [], []>} : vector<32x16xf32>, vector<16x160xf32>, vector<32x160xf32> -> vector<32x160xf32>
    %27 = vector.broadcast %5 : vector<1x160xf32> to vector<32x160xf32>
    %28 = arith.mulf %24, %27 : vector<32x160xf32>
    %29 = arith.addf %26, %28 : vector<32x160xf32>
    %30 = vector.broadcast %6 : vector<1x160xf32> to vector<32x160xf32>
    %31 = arith.addf %29, %30 : vector<32x160xf32>
    %cst_15 = arith.constant 0.000000e+00 : f32
    %32 = vector.broadcast %cst_15 : f32 to vector<32x160xf32>
    %33 = arith.maximumf %31, %32 : vector<32x160xf32>
    %34 = vector.extract_strided_slice %24 {offsets = [0, 0], sizes = [32, 5], strides = [1, 1]} : vector<32x160xf32> to vector<32x5xf32>
    %c0_16 = arith.constant 0 : index
    %c0_17 = arith.constant 0 : index
    %35 = vector.load %arg6[%c0_16, %c0_17] : memref<160x5xf32, #tpu.memory_space<vmem>>, vector<160x5xf32>
    %cst_18 = arith.constant dense<0.000000e+00> : vector<32x5xf32>
    %36 = tpu.matmul %33, %35, %cst_18 {dimension_numbers = #tpu.dot_dimension_numbers<[1], [0], [0], [1], [0, 0, 1, 1], [], []>} : vector<32x160xf32>, vector<160x5xf32>, vector<32x5xf32> -> vector<32x5xf32>
    %37 = vector.broadcast %7 : vector<1x5xf32> to vector<32x5xf32>
    %38 = arith.mulf %34, %37 : vector<32x5xf32>
    %39 = arith.addf %36, %38 : vector<32x5xf32>
    %40 = vector.broadcast %8 : vector<1x5xf32> to vector<32x5xf32>
    %41 = arith.addf %39, %40 : vector<32x5xf32>
    %42 = vector.broadcast %9 : vector<1x5xf32> to vector<32x5xf32>
    %43 = arith.cmpf oge, %34, %42 : vector<32x5xf32>
    %44 = vector.broadcast %10 : vector<1x5xf32> to vector<32x5xf32>
    %45 = arith.cmpf olt, %34, %44 : vector<32x5xf32>
    %46 = arith.andi %43, %45 : vector<32x5xi1>
    %cst_19 = arith.constant 0.000000e+00 : f32
    %47 = vector.broadcast %cst_19 : f32 to vector<32x5xf32>
    %48 = arith.select %46, %41, %47 : vector<32x5xi1>, vector<32x5xf32>
    %cst_20 = arith.constant dense<0.000000e+00> : vector<32xf32>
    %49 = vector.multi_reduction <add>, %48, %cst_20 [1] : vector<32x5xf32> to vector<32xf32>
    %50 = vector.shape_cast %49 : vector<32xf32> to vector<32x1xf32>
    %c0_21 = arith.constant 0 : index
    %c0_22 = arith.constant 0 : index
    %51 = vector.load %arg8[%c0_21, %c0_22] : memref<32x1xf32, #tpu.memory_space<vmem>>, vector<32x1xf32>
    tpu.vector_store %arg8[%c0_21, %c0_22], %50 {strides = array<i32>} : memref<32x1xf32, #tpu.memory_space<vmem>>, vector<32x1xf32>,
    return
  }
  func.func @transform_0(%arg0: i32) -> (i32, i32) {
    %c0_i32 = arith.constant 0 : i32
    %c0_i32_0 = arith.constant 0 : i32
    return %arg0, %c0_i32 : i32, i32
  }
  func.func @transform_1(%arg0: i32) -> (i32, i32) {
    %c0_i32 = arith.constant 0 : i32
    %c0_i32_0 = arith.constant 0 : i32
    return %arg0, %c0_i32 : i32, i32
  }
  func.func @transform_2(%arg0: i32) -> (i32, i32) {
    %c0_i32 = arith.constant 0 : i32
    %c0_i32_0 = arith.constant 0 : i32
    %c0_i32_1 = arith.constant 0 : i32
    return %c0_i32, %c0_i32_0 : i32, i32
  }
  func.func @transform_3(%arg0: i32) -> (i32, i32) {
    %c0_i32 = arith.constant 0 : i32
    %c0_i32_0 = arith.constant 0 : i32
    %c0_i32_1 = arith.constant 0 : i32
    return %c0_i32, %c0_i32_0 : i32, i32
  }
  func.func @transform_4(%arg0: i32) -> (i32, i32) {
    %c0_i32 = arith.constant 0 : i32
    %c0_i32_0 = arith.constant 0 : i32
    %c0_i32_1 = arith.constant 0 : i32
    return %c0_i32, %c0_i32_0 : i32, i32
  }
  func.func @transform_5(%arg0: i32) -> (i32, i32) {
    %c0_i32 = arith.constant 0 : i32
    %c0_i32_0 = arith.constant 0 : i32
    %c0_i32_1 = arith.constant 0 : i32
    return %c0_i32, %c0_i32_0 : i32, i32
  }
  func.func @transform_6(%arg0: i32) -> (i32, i32) {
    %c0_i32 = arith.constant 0 : i32
    %c0_i32_0 = arith.constant 0 : i32
    %c0_i32_1 = arith.constant 0 : i32
    return %c0_i32, %c0_i32_0 : i32, i32
  }
  func.func @transform_7(%arg0: i32) -> (i32, i32) {
    %c0_i32 = arith.constant 0 : i32
    %c0_i32_0 = arith.constant 0 : i32
    return %arg0, %c0_i32 : i32, i32
  }
}

</mosaic_0001>

<bundles_post_ra>
// kernel: tpu_custom_call.1
= control target key start
LH: loop header
LB: loop body
LE: loop exit
PB: predicated region body
PF: predicated region fallthrough
CT: control target
= control target key end

     0   :  { %s896_s24 = smov 0   ;;  %s1080_s0 = inlined_call_operand.vmem [shape: f32[50,1], index: 0, kind: input, shape index: {}]   ;;  %s1081_s1 = inlined_call_operand.vmem [shape: f32[50,4], index: 1, kind: input, shape index: {}]   ;;  %s1082_s2 = inlined_call_operand.vmem [shape: f32[4,32], index: 2, kind: input, shape index: {}]   ;;  %s1083_s3 = inlined_call_operand.vmem [shape: f32[32,16], index: 3, kind: input, shape index: {}]   ;;  %s1084_s4 = inlined_call_operand.vmem [shape: f32[16,160], index: 4, kind: input, shape index: {}]   ;;  %s1085_s5 = inlined_call_operand.vmem [shape: f32[160,5], index: 5, kind: input, shape index: {}]   ;;  %s1086_s6 = inlined_call_operand.vmem [shape: f32[8,160], index: 6, kind: input, shape index: {}]   ;;  %s1087_s7 = inlined_call_operand.vmem [shape: f32[64,1], index: 7, kind: output, shape index: {}]  }
   0x1 LB: > { %s784_s25 = sadd.s32 4294967295, %s853_s24   ;;  %p788_p0 = scmp.ge.s32.totalorder %s853_s24, 1  ;;  %s853_s24 = sphi %s896_s24, %s17_s24  }
   0x2   : > { %p265_p1 = scmp.lt.s32.totalorder %s853_s24, 3 }
   0x4   : > { %p266_p2 = pnand %p788_p0, %p265_p1 }
   0x5   : > { %s907_s28 = sshll.u32 (!%p266_p2), %s784_s25, 2 }
   0x6   : > { %269 = sbr.rel (%p266_p2) target bundleno = 725 (0x2d5), region = 48  ;;  %p315_p3 = scmp.lt.s32.totalorder (!%p266_p2), %s907_s28, 6 }
   0x7   : > { %p339_p4 = scmp.lt.s32.totalorder (!%p266_p2), %s907_s28, 7 }
   0xb   : > { %v354_v0 = vld [vmem:[%s1082_s2] sm:$0xf]  ;;  %vm369_vm0 = vcmask 1043456   ;;  %v409_v1 = vld [vmem:[%s1083_s3 + $0x18] sm:$0xff]  ;;  %s914_s8 = scalar_select %p315_p3, %s907_s28, 6  ;;  %vm356_vm1 = vcmask 31744  }
   0xc   : > { %795 = vmatpush.msk.msra.mxu0 %vm369_vm0, %v354_v0  ;;  %436 = vmatpush.msra.mxu1 %v409_v1  ;;  %v408_v6 = vld [vmem:[%s1083_s3 + $0x10] sm:$0xff]  ;;  %v407_v7 = vld [vmem:[%s1083_s3 + $0x8] sm:$0xff]  ;;  %v406_v8 = vld [vmem:[%s1083_s3] sm:$0xff]  ;;  %vm411_vm2 = vcmask 261120   ;;  %v855_v25 = vmov 0   ;;  %vm491_vm3 = vcmask 130048  }
   0xd   : > { %s790_s9 = sshll.u32 %s914_s8, 3  ;;  %v934_v9 = vld [vmem:[%s1086_s6] sm:$0xff]  ;;  %v479_v23 = vld [vmem:[%s1084_s4 + $0x10] sm:$0xff]  ;;  %845 = vset.pattern.permute.xlu0 %v855_v25  ;;  %846 = vset.pattern.permute.xlu1 %v855_v25  ;;  %v480_v27 = vld [vmem:[%s1084_s4 + $0x18] sm:$0xff]  ;;  %vm698_vm6 = vcmask 39936   ;;  %s1089_s28 = smov (!%p339_p4, %s907_s28), 7 }
   0xe   : > { %s332_s12 = scalar_lea.vmem %s1081_s1, %s790_s9  ;;  %437 = vmatpush.msra.mxu1 %v408_v6  ;;  %v355_v10 = vperm.slane %v934_v9, 0  ;;  %518 = vmatpush.msra.mxu2 %v479_v23  ;;  %v477_v24 = vld [vmem:[%s1084_s4] sm:$0xff]  ;;  %s318_s29 = scalar_lea.vmem %s1080_s0, %s790_s9  ;;  %v410_v29 = vperm.slane %v934_v9, 1  ;;  %v478_v30 = vld [vmem:[%s1084_s4 + $0x8] sm:$0xff]  ;;  %v595_v45 = vld [vmem:[%s1085_s5 + $0x78] sm:$0xff]  ;;  %v481_v63 = vperm.slane %v934_v9, 2 }
   0xf   : > { %v348_v2 = vld [vmem:[%s332_s12] sm:$0xff]  ;;  %v349_v3 = vld [vmem:[%s332_s12 + $0x8] sm:$0xff]  ;;  %v350_v4 = vld [vmem:[%s332_s12 + $0x10] sm:$0xff]  ;;  %818 = vmatpush.msra.mxu3 %v479_v23  ;;  %617 = vmatpush.msrb.mxu0 %v595_v45  ;;  %s794_s9 = sshll.u32 %s1089_s28, 3 }
  0x10   : > { %796 = vmatmul.msk.f32.vlgmr.msra.gmra.mxu0 %vm356_vm1, %v348_v2  ;;  %v351_v5 = vld [vmem:[%s332_s12 + $0x18] sm:$0xff]  ;;  %438 = vmatpush.msra.mxu1 %v407_v7  ;;  %v344_v26 = vld [vmem:[%s318_s29] sm:$0xff]  ;;  %v345_v28 = vld [vmem:[%s318_s29 + $0x8] sm:$0xff]  ;;  %v562_v2 = vperm.slane %v934_v9, 3  ;;  %s342_s14 = scalar_lea.vmem %s1087_s7, %s794_s9 }
  0x11   : > { %519 = vmatpush.msra.mxu2 %v477_v24  ;;  %819 = vmatpush.msra.mxu3 %v477_v24  ;;  %v346_v31 = vld [vmem:[%s318_s29 + $0x10] sm:$0xff]  ;;  %v347_v35 = vld [vmem:[%s318_s29 + $0x18] sm:$0xff]  ;;  %v593_v47 = vld [vmem:[%s1085_s5 + $0x68] sm:$0xff] }
  0x12   : > { %439 = vmatpush.msra.mxu1 %v406_v8  ;;  %459 = vperm.xlu0 %845, %v344_v26   ;;  %v594_v46 = vld [vmem:[%s1085_s5 + $0x70] sm:$0xff]  ;;  %v592_v48 = vld [vmem:[%s1085_s5 + $0x60] sm:$0xff]  ;;  %v591_v49 = vld [vmem:[%s1085_s5 + $0x58] sm:$0xff] }
  0x13   : > { %547 = vmatpush.msrb.mxu3 %v480_v27  ;;  %469 = vperm.xlu1 %846, %v346_v31   ;;  %v590_v50 = vld [vmem:[%s1085_s5 + $0x50] sm:$0xff]  ;;  %v589_v51 = vld [vmem:[%s1085_s5 + $0x48] sm:$0xff]  ;;  %v588_v52 = vld [vmem:[%s1085_s5 + $0x40] sm:$0xff] }
  0x14   : > { %820 = vmatpush.msrb.mxu1 %v595_v45  ;;  %618 = vmatpush.msrb.mxu0 %v594_v46  ;;  %v587_v53 = vld [vmem:[%s1085_s5 + $0x38] sm:$0xff]  ;;  %v586_v54 = vld [vmem:[%s1085_s5 + $0x30] sm:$0xff]  ;;  %v585_v55 = vld [vmem:[%s1085_s5 + $0x28] sm:$0xff] }
  0x15   : > { %548 = vmatpush.msrb.mxu3 %v478_v30  ;;  %v584_v56 = vld [vmem:[%s1085_s5 + $0x20] sm:$0xff]  ;;  %v583_v57 = vld [vmem:[%s1085_s5 + $0x18] sm:$0xff]  ;;  %v582_v58 = vld [vmem:[%s1085_s5 + $0x10] sm:$0xff] }
  0x16   : > { %821 = vmatpush.msrb.mxu1 %v594_v46  ;;  %619 = vmatpush.msrb.mxu0 %v593_v47  ;;  %v581_v59 = vld [vmem:[%s1085_s5 + $0x8] sm:$0xff]  ;;  %v580_v60 = vld [vmem:[%s1085_s5] sm:$0xff]  ;;  %v599_v61 = vld [vmem:[%s1085_s5 + $0x98] sm:$0xff] }
  0x17   : > { %658 = vmatpush.msrb.mxu2 %v599_v61  ;;  %v598_v1 = vld [vmem:[%s1085_s5 + $0x90] sm:$0xff]  ;;  %v353_v24 = vld [vmem:[%s1086_s6 + $0x8] sm:$0xff] }
  0x18   : > { %797 = vmatmul.msk.f32.gmra.mxu0 %vm356_vm1, %v349_v3  ;;  %822 = vmatpush.msrb.mxu1 %v593_v47  ;;  %v597_v3 = vld [vmem:[%s1085_s5 + $0x88] sm:$0xff]  ;;  %v482_v27 = vperm.slane %v353_v24, 2  ;;  %v563_v31 = vperm.slane %v353_v24, 3 }
  0x19   : > { %620 = vmatpush.msrb.mxu0 %v592_v48  ;;  %659 = vmatpush.msrb.mxu2 %v598_v1 }
  0x1a   : > { %464 = vperm.xlu0 %845, %v345_v28   ;;  %823 = vmatpush.msrb.mxu1 %v592_v48 }
  0x1b   : > { %474 = vperm.xlu1 %846, %v347_v35   ;;  %621 = vmatpush.msrb.mxu0 %v591_v49 }
  0x1c   : > { %824 = vmatpush.msrb.mxu1 %v591_v49  ;;  %660 = vmatpush.msrb.mxu2 %v597_v3 }
  0x1d   : > { %622 = vmatpush.msrb.mxu0 %v590_v50 }
  0x1e   : > { %825 = vmatpush.msrb.mxu1 %v590_v50 }
  0x1f   : > { %623 = vmatpush.msrb.mxu0 %v589_v51 }
  0x20   : > { %798 = vmatmul.msk.f32.gmra.mxu0 %vm356_vm1, %v350_v4  ;;  %826 = vmatpush.msrb.mxu1 %v589_v51 }
  0x21   : > { %624 = vmatpush.msrb.mxu0 %v588_v52 }
  0x22   : > { %827 = vmatpush.msrb.mxu1 %v588_v52  ;;  %v600_v52 = vperm.slane %v934_v9, 4 }
  0x23   : > { %625 = vmatpush.msrb.mxu0 %v587_v53 }
  0x24   : > { %828 = vmatpush.msrb.mxu1 %v587_v53 }
  0x25   : > { %626 = vmatpush.msrb.mxu0 %v586_v54 }
  0x26   : > { %829 = vmatpush.msrb.mxu1 %v586_v54  ;;  %v680_v54 = vperm.slane %v934_v9, 6 }
  0x27   : > { %627 = vmatpush.msrb.mxu0 %v585_v55 }
  0x28   : > { %799 = vmatmul.msk.f32.gmra.mxu0 %vm356_vm1, %v351_v5  ;;  %830 = vmatpush.msrb.mxu1 %v585_v55  ;;  %v685_v55 = vperm.slane %v934_v9, 7  ;;  %vm711_vm1 = vcmask 7168  }
  0x29   : > { %628 = vmatpush.msrb.mxu0 %v584_v56 }
  0x2a   : > { %831 = vmatpush.msrb.mxu1 %v584_v56 }
  0x2b   : > { %629 = vmatpush.msrb.mxu0 %v583_v57 }
  0x2c   : > { %832 = vmatpush.msrb.mxu1 %v583_v57  ;;  %v675_v57 = vperm.slane %v934_v9, 5 }
  0x2d   : > { %630 = vmatpush.msrb.mxu0 %v582_v58 }
  0x2e   : > { %833 = vmatpush.msrb.mxu1 %v582_v58 }
  0x2f   : > { %631 = vmatpush.msrb.mxu0 %v581_v59 }
  0x30   : > { %834 = vmatpush.msrb.mxu1 %v581_v59 }
  0x31   : > { %632 = vmatpush.msrb.mxu0 %v580_v60 }
  0x32   : > { %835 = vmatpush.msrb.mxu1 %v580_v60 }
  0x84   : > { %v1018_v62 = vpop.permute.xlu0 %459 }
  0x85   : > { %v483_v0 = vmul.f32 %v481_v63, %v1018_v62  ;;  %v484_v30 = vmul.f32 %v482_v27, %v1018_v62  ;;  %v601_v53 = vmul.f32 %v600_v52, %v1018_v62  ;;  %vm681_vm4 = vcmp.ge.f32.partialorder %v1018_v62, %v680_v54 }
  0x86   : > { %vm686_vm5 = vcmp.lt.f32.partialorder %v1018_v62, %v685_v55 }
  0x87   : > { %vm690_vm7 = vmand %vm681_vm4, %vm686_vm5 }
  0x8c   : > { %v1029_v6 = vpop.permute.xlu0 %464 }
  0x8d   : > { %v390_v11 = vpop.f32.mrf.mxu0  ;;  %vm682_vm8 = vcmp.ge.f32.partialorder %v1029_v6, %v680_v54  ;;  %vm687_vm9 = vcmp.lt.f32.partialorder %v1029_v6, %v685_v55 }
  0x8e   : > { %v391_v12 = vadd.f32 %v390_v11, %v355_v10  ;;  %v596_v11 = vld [vmem:[%s1085_s5 + $0x80] sm:$0xff]  ;;  %vm691_vm10 = vmand %vm682_vm8, %vm687_vm9 }
  0x8f   : > { %661 = vmatpush.msrb.mxu2 %v596_v11 }
  0x90   : > { %v402_v13 = vmax.f32 %v391_v12, 0.0 }
  0x92   : > { %800 = vmatmul.msk.f32.vlgmr.msra.gmra.mxu1 %vm411_vm2, %v402_v13  ;;  %v1035_v13 = vpop.permute.xlu1 %469 }
  0x93   : > { %v603_v62 = vmul.f32 %v600_v52, %v1035_v13  ;;  %vm683_vm11 = vcmp.ge.f32.partialorder %v1035_v13, %v680_v54  ;;  %vm688_vm12 = vcmp.lt.f32.partialorder %v1035_v13, %v685_v55 }
  0x94   : > { %vm692_vm13 = vmand %vm683_vm11, %vm688_vm12 }
  0x95   : > { %v393_v14 = vpop.f32.mrf.mxu0 }
  0x96   : > { %v394_v15 = vadd.f32 %v393_v14, %v355_v10 }
  0x98   : > { %v403_v16 = vmax.f32 %v394_v15, 0.0 }
  0x9a   : > { %801 = vmatmul.msk.f32.gmra.mxu1 %vm411_vm2, %v403_v16 }
  0x9d   : > { %v396_v17 = vpop.f32.mrf.mxu0 }
  0x9e   : > { %v397_v18 = vadd.f32 %v396_v17, %v355_v10  ;;  %v487_v17 = vmul.f32 %v481_v63, %v1035_v13 }
  0xa0   : > { %v404_v19 = vmax.f32 %v397_v18, 0.0 }
  0xa2   : > { %802 = vmatmul.msk.f32.gmra.mxu1 %vm411_vm2, %v404_v19 }
  0xa5   : > { %v399_v20 = vpop.f32.mrf.mxu0 }
  0xa6   : > { %v400_v21 = vadd.f32 %v399_v20, %v355_v10  ;;  %v485_v10 = vmul.f32 %v481_v63, %v1029_v6  ;;  %v1038_v20 = vpop.permute.xlu1 %474 }
  0xa7   : > { %v489_v23 = vmul.f32 %v481_v63, %v1038_v20  ;;  %v490_v46 = vmul.f32 %v482_v27, %v1038_v20  ;;  %v602_v63 = vmul.f32 %v600_v52, %v1029_v6  ;;  %vm684_vm14 = vcmp.ge.f32.partialorder %v1038_v20, %v680_v54 }
  0xa8   : > { %v405_v22 = vmax.f32 %v400_v21, 0.0  ;;  %vm689_vm15 = vcmp.lt.f32.partialorder %v1038_v20, %v685_v55 }
  0xa9   : > { %vm693_vm0 = vmand %vm684_vm14, %vm689_vm15 }
  0xaa   : > { %803 = vmatmul.msk.f32.gmra.mxu1 %vm411_vm2, %v405_v22 }
 0x10f   : > { %v441_v32 = vpop.f32.mrf.mxu1 }
 0x110   : > { %v442_v33 = vadd.f32 %v441_v32, %v410_v29 }
 0x112   : > { %v453_v34 = vmax.f32 %v442_v33, 0.0 }
 0x114   : > { %804 = vmatmul.msk.f32.vlgmr.msra.gmra.mxu2 %vm491_vm3, %v453_v34 }
 0x117   : > { %v444_v36 = vpop.f32.mrf.mxu1 }
 0x118   : > { %v445_v37 = vadd.f32 %v444_v36, %v410_v29  ;;  %v486_v36 = vmul.f32 %v482_v27, %v1029_v6  ;;  %v604_v6 = vmul.f32 %v600_v52, %v1038_v20 }
 0x11a   : > { %v454_v38 = vmax.f32 %v445_v37, 0.0 }
 0x11c   : > { %805 = vmatmul.msk.f32.gmra.mxu2 %vm491_vm3, %v454_v38 }
 0x11f   : > { %v447_v39 = vpop.f32.mrf.mxu1 }
 0x120   : > { %v448_v40 = vadd.f32 %v447_v39, %v410_v29 }
 0x122   : > { %v455_v41 = vmax.f32 %v448_v40, 0.0 }
 0x124   : > { %806 = vmatmul.msk.f32.vlgmr.msra.gmra.mxu3 %vm491_vm3, %v455_v41 }
 0x127   : > { %v450_v42 = vpop.f32.mrf.mxu1 }
 0x128   : > { %v451_v43 = vadd.f32 %v450_v42, %v410_v29 }
 0x12a   : > { %v456_v44 = vmax.f32 %v451_v43, 0.0 }
 0x12c   : > { %807 = vmatmul.msk.f32.gmra.mxu3 %vm491_vm3, %v456_v44 }
 0x134   : > { %808 = vmatmul.msk.f32.vlgmr.msrb.gmra.mxu3 %vm491_vm3, %v453_v34 }
 0x13c   : > { %809 = vmatmul.msk.f32.gmra.mxu3 %vm491_vm3, %v454_v38 }
 0x144   : > { %810 = vmatmul.msk.f32.gmra.mxu3 %vm491_vm3, %v455_v41  ;;  %v488_v41 = vmul.f32 %v482_v27, %v1035_v13 }
 0x14c   : > { %811 = vmatmul.msk.f32.gmra.mxu3 %vm491_vm3, %v456_v44 }
 0x197   : > { %v521_v4 = vpop.f32.mrf.mxu2 }
 0x198   : > { %v522_v5 = vadd.f32 %v521_v4, %v483_v0 }
 0x19a   : > { %v564_v7 = vadd.f32 %v562_v2, %v522_v5 }
 0x19c   : > { %v572_v8 = vmax.f32 %v564_v7, 0.0 }
 0x19e   : > { %633 = vmatmul.f32.vlgmr.msrb.gmra.mxu0 %v572_v8 }
 0x19f   : > { %v524_v12 = vpop.f32.mrf.mxu2 }
 0x1a0   : > { %v525_v14 = vadd.f32 %v524_v12, %v485_v10 }
 0x1a2   : > { %v566_v15 = vadd.f32 %v562_v2, %v525_v14 }
 0x1a4   : > { %v574_v16 = vmax.f32 %v566_v15, 0.0 }
 0x1a6   : > { %636 = vmatmul.f32.gmra.mxu0 %v574_v16 }
 0x1a7   : > { %v527_v18 = vpop.f32.mrf.mxu3 }
 0x1a8   : > { %v528_v19 = vadd.f32 %v527_v18, %v487_v17 }
 0x1aa   : > { %v568_v21 = vadd.f32 %v562_v2, %v528_v19 }
 0x1ac   : > { %v576_v22 = vmax.f32 %v568_v21, 0.0 }
 0x1ae   : > { %639 = vmatmul.f32.gmra.mxu0 %v576_v22 }
 0x1af   : > { %v530_v25 = vpop.f32.mrf.mxu3 }
 0x1b0   : > { %v531_v26 = vadd.f32 %v530_v25, %v489_v23 }
 0x1b2   : > { %v570_v28 = vadd.f32 %v562_v2, %v531_v26 }
 0x1b4   : > { %v578_v29 = vmax.f32 %v570_v28, 0.0 }
 0x1b6   : > { %642 = vmatmul.f32.vlgmr.msrb.gmra.mxu1 %v578_v29 }
 0x1b7   : > { %v550_v32 = vpop.f32.mrf.mxu3 }
 0x1b8   : > { %v551_v33 = vadd.f32 %v550_v32, %v484_v30 }
 0x1ba   : > { %v565_v34 = vadd.f32 %v563_v31, %v551_v33 }
 0x1bc   : > { %v573_v35 = vmax.f32 %v565_v34, 0.0 }
 0x1be   : > { %812 = vmatmul.msk.f32.vlgmr.msrb.gmra.mxu2 %vm411_vm2, %v573_v35 }
 0x1bf   : > { %v553_v37 = vpop.f32.mrf.mxu3 }
 0x1c0   : > { %v554_v38 = vadd.f32 %v553_v37, %v486_v36 }
 0x1c2   : > { %v567_v39 = vadd.f32 %v563_v31, %v554_v38 }
 0x1c4   : > { %v575_v40 = vmax.f32 %v567_v39, 0.0 }
 0x1c6   : > { %813 = vmatmul.msk.f32.gmra.mxu2 %vm411_vm2, %v575_v40 }
 0x1c7   : > { %v556_v42 = vpop.f32.mrf.mxu3 }
 0x1c8   : > { %v557_v43 = vadd.f32 %v556_v42, %v488_v41 }
 0x1ca   : > { %v569_v44 = vadd.f32 %v563_v31, %v557_v43 }
 0x1cc   : > { %v577_v45 = vmax.f32 %v569_v44, 0.0 }
 0x1ce   : > { %814 = vmatmul.msk.f32.gmra.mxu2 %vm411_vm2, %v577_v45 }
 0x1cf   : > { %v559_v47 = vpop.f32.mrf.mxu3 }
 0x1d0   : > { %v560_v48 = vadd.f32 %v559_v47, %v490_v46 }
 0x1d2   : > { %v571_v49 = vadd.f32 %v563_v31, %v560_v48 }
 0x1d4   : > { %v579_v50 = vmax.f32 %v571_v49, 0.0 }
 0x1d6   : > { %815 = vmatmul.msk.f32.gmra.mxu2 %vm411_vm2, %v579_v50 }
 0x21b   : > { %v634_v51 = vpop.f32.mrf.mxu0 }
 0x21c   : > { %v635_v56 = vadd.f32 %v634_v51, %v601_v53 }
 0x223   : > { %v637_v60 = vpop.f32.mrf.mxu0 }
 0x224   : > { %v638_v2 = vadd.f32 %v637_v60, %v602_v63 }
 0x22b   : > { %v640_v5 = vpop.f32.mrf.mxu0 }
 0x22c   : > { %v641_v10 = vadd.f32 %v640_v5, %v603_v62 }
 0x233   : > { %v643_v15 = vpop.f32.mrf.mxu1 }
 0x234   : > { %v644_v18 = vadd.f32 %v643_v15, %v604_v6 }
 0x241   : > { %v663_v58 = vpop.f32.mrf.mxu2 }
 0x242   : > { %v664_v59 = vadd.f32 %v663_v58, %v635_v56 }
 0x244   : > { %v676_v61 = vadd.f32 %v675_v57, %v664_v59 }
 0x246   : > { %v694_v0 = vsel %vm690_vm7, %v676_v61, 0.0 }
 0x247   : > { %v699_v1 = vsel %vm698_vm6, %v694_v0, 0.0 }
 0x248   : > { %700 = vadd.xlane.f32.xlu2 %v699_v1 }
 0x249   : > { %v666_v3 = vpop.f32.mrf.mxu2 }
 0x24a   : > { %v667_v4 = vadd.f32 %v666_v3, %v638_v2 }
 0x24c   : > { %v677_v9 = vadd.f32 %v675_v57, %v667_v4 }
 0x24e   : > { %v695_v7 = vsel %vm691_vm10, %v677_v9, 0.0 }
 0x24f   : > { %v702_v8 = vsel %vm698_vm6, %v695_v7, 0.0 }
 0x250   : > { %703 = vadd.xlane.f32.xlu2 %v702_v8 }
 0x251   : > { %v669_v11 = vpop.f32.mrf.mxu2 }
 0x252   : > { %v670_v12 = vadd.f32 %v669_v11, %v641_v10 }
 0x254   : > { %v678_v14 = vadd.f32 %v675_v57, %v670_v12 }
 0x256   : > { %v696_v16 = vsel %vm692_vm13, %v678_v14, 0.0 }
 0x257   : > { %v705_v17 = vsel %vm698_vm6, %v696_v16, 0.0 }
 0x258   : > { %706 = vadd.xlane.f32.xlu0 %v705_v17 }
 0x259   : > { %v672_v19 = vpop.f32.mrf.mxu2 }
 0x25a   : > { %v673_v21 = vadd.f32 %v672_v19, %v644_v18 }
 0x25c   : > { %v679_v22 = vadd.f32 %v675_v57, %v673_v21 }
 0x25e   : > { %v697_v13 = vsel %vm693_vm0, %v679_v22, 0.0 }
 0x25f   : > { %v708_v23 = vsel %vm698_vm6, %v697_v13, 0.0 }
 0x260   : > { %709 = vadd.xlane.f32.xlu1 %v708_v23 }
 0x2bb   : > { %v701_v24 = vpop.xlane.xlu2 %700 }
 0x2bc   : > { %712 = vst.msk [vmem:[%s342_s14] sm:$0xff] %vm711_vm1, %v701_v24 }
 0x2c3   : > { %v704_v25 = vpop.xlane.xlu2 %703 }
 0x2c4   : > { %713 = vst.msk [vmem:[%s342_s14 + $0x8] sm:$0xff] %vm711_vm1, %v704_v25 }
 0x2cb   : > { %v707_v26 = vpop.xlane.xlu0 %706 }
 0x2cc   : > { %714 = vst.msk [vmem:[%s342_s14 + $0x10] sm:$0xff] %vm711_vm1, %v707_v26 }
 0x2d3   : > { %v710_v20 = vpop.xlane.xlu1 %709 }
 0x2d4   : > { %715 = vst.msk [vmem:[%s342_s14 + $0x18] sm:$0xff] %vm711_vm1, %v710_v20 }
 0x2d5 PF: > { %s17_s24 = sadd.s32 1, %s853_s24  }
 0x2d6   : > { %p14_p5 = scmp.ge.s32.totalorder %s17_s24, 4  }
 0x2d8   :  { %16 = sbr.rel (!%p14_p5) target bundleno = 1 (0x1), region = 81 }

</bundles_post_ra>
